<compile_context>
chip_gen: v6e
topology: v6e:2x2x1
jax: 0.10.0
libtpu: 0.0.40
codegen_flags: <defaults>
</compile_context>

<pallas_src>
import functools

import jax
import jax.numpy as jnp
from jax.experimental import pallas as pl
from jax.experimental.pallas import tpu as pltpu


def _decoder_kernel(x_ref, w1_ref, b1_ref, w2_ref, b2_ref, o_ref,
                    *, K1, K2, L, pad2, Cin2):
    """Fused CNNDecoder forward for one batch element.

    x_ref : (1, Cin, L + K1 - 1)   padded input, VMEM
    w1_ref: (Cout1, K1*Cin)        conv1 weights, tap-major flattened, VMEM
    b1_ref: (Cout1, 1)             conv1 bias, VMEM
    w2_ref: (Cin2*K2,)             conv2 weights flattened as [cin, tap], SMEM
    b2_ref: (1,)                   conv2 bias, SMEM
    o_ref : (1, 1, 15*L)           output, VMEM
    """
    f32 = jnp.float32
    L5 = 5 * L                 # length after Upsample(x5)
    Lp2 = L5 + 2 * pad2        # conv2 input length incl. zero padding
    Lout = 3 * L5              # final length after Upsample(x3)

    x = x_ref[0]                                                     # (Cin, L + K1 - 1)

    # ---- conv1 + bias + ReLU: one fused MXU matmul over an in-kernel im2col ----
    # patches[t*Cin + ci, j] = x_pad[ci, j + t]  -> contraction depth K1*Cin (=80)
    patches = jnp.concatenate([x[:, t:t + L] for t in range(K1)], axis=0)  # (K1*Cin, L)
    h1 = jnp.dot(w1_ref[...], patches, preferred_element_type=f32)         # (Cout1, L)
    h1 = jnp.maximum(h1 + b1_ref[...], 0.0)
    # dropout(p=0.5): identity in eval mode

    # ---- nearest upsample x5 (with conv2's zero padding folded in) as a 0/1 matmul in VMEM ----
    # up5[i, j] = 1  iff  pad2 + 5*i <= j < pad2 + 5*i + 5   (border columns are all zero)
    row5 = jax.lax.broadcasted_iota(jnp.int32, (L, Lp2), 0)
    col5 = jax.lax.broadcasted_iota(jnp.int32, (L, Lp2), 1)
    lo5 = pad2 + 5 * row5
    up5 = jnp.logical_and(col5 >= lo5, col5 < lo5 + 5).astype(f32)          # (L, Lp2)
    h1u = jnp.dot(h1, up5, preferred_element_type=f32)                      # (Cout1, Lp2)

    # ---- conv2 + bias + ReLU on the VPU: scalar-broadcast MACs, length on the lane axis ----
    acc = jnp.zeros((1, L5), f32)
    for c in range(Cin2):
        for t in range(K2):
            acc = acc + w2_ref[c * K2 + t] * h1u[c:c + 1, t:t + L5]
    y = jnp.maximum(acc + b2_ref[0], 0.0)                                   # (1, L5)
    # dropout(p=0.5): identity in eval mode

    # ---- nearest upsample x3 as a 0/1 matmul; lane-dense store of the full output row ----
    row3 = jax.lax.broadcasted_iota(jnp.int32, (L5, Lout), 0)
    col3 = jax.lax.broadcasted_iota(jnp.int32, (L5, Lout), 1)
    lo3 = 3 * row3
    up3 = jnp.logical_and(col3 >= lo3, col3 < lo3 + 3).astype(f32)          # (L5, Lout)
    o_ref[0] = jnp.dot(y, up3, preferred_element_type=f32).astype(o_ref.dtype)  # (1, Lout)

    # TODO(synk): training-mode Dropout(p=0.5) would need pltpu.prng_seed/prng_random_bits masking.


def cnn_decoder_forward(x, params, kernel_size):
    """CNNDecoder forward. x: (N, 16, L) float32 -> (N, 1, 15*L) float32."""
    N, Cin, L = x.shape
    K1 = kernel_size
    K2 = kernel_size - 2
    assert K1 % 2 == 1 and K2 >= 1, "kernel_size must be odd (>=3) so padding preserves length"
    pad1, pad2 = K1 // 2, K2 // 2

    w1, b1, w2, b2 = params["w1"], params["b1"], params["w2"], params["b2"]
    Cout1, _, _ = w1.shape          # (4, 16, K1)
    Cout2, Cin2, _ = w2.shape       # (1, 4, K2)
    Lp1 = L + 2 * pad1
    Lout = 15 * L

    # Host-side prep (tiny, one-time): pad input, flatten conv1 weights tap-major, conv2 flat.
    x_pad = jnp.pad(x, ((0, 0), (0, 0), (pad1, pad1)))
    w1f = jnp.transpose(w1, (0, 2, 1)).reshape(Cout1, K1 * Cin)   # [co, t*Cin + ci] = w1[co, ci, t]
    b1c = b1.reshape(Cout1, 1)
    w2f = w2.reshape(Cout2 * Cin2 * K2).astype(jnp.float32)       # index = c*K2 + t
    b2c = b2.reshape(1).astype(jnp.float32)

    kernel = functools.partial(_decoder_kernel, K1=K1, K2=K2, L=L, pad2=pad2, Cin2=Cin2)

    return pl.pallas_call(
        kernel,
        out_shape=jax.ShapeDtypeStruct((N, Cout2, Lout), jnp.float32),
        grid_spec=pltpu.PrefetchScalarGridSpec(
            num_scalar_prefetch=0,
            grid=(N,),
            in_specs=[
                pl.BlockSpec((1, Cin, Lp1), lambda n: (n, 0, 0)),
                pl.BlockSpec((Cout1, K1 * Cin), lambda n: (0, 0)),
                pl.BlockSpec((Cout1, 1), lambda n: (0, 0)),
                pl.BlockSpec(memory_space=pltpu.MemorySpace.SMEM),   # conv2 weights (scalars)
                pl.BlockSpec(memory_space=pltpu.MemorySpace.SMEM),   # conv2 bias (scalar)
            ],
            out_specs=pl.BlockSpec((1, Cout2, Lout), lambda n: (n, 0, 0)),
        ),
        compiler_params=pltpu.CompilerParams(
            dimension_semantics=("parallel",)),   # v7x: one batch element per TensorCore
    )(x_pad, w1f, b1c, w2f, b2c)


def init_params(key, kernel_size):
    """Deterministic init matching PyTorch Conv1d parameter shapes."""
    k1, k2, k3, k4 = jax.random.split(key, 4)

    def conv_init(kw, kb, cout, cin, ks):
        bound = 1.0 / jnp.sqrt(cin * ks)
        w = jax.random.uniform(kw, (cout, cin, ks), jnp.float32, -bound, bound)
        b = jax.random.uniform(kb, (cout,), jnp.float32, -bound, bound)
        return w, b

    w1, b1 = conv_init(k1, k2, 4, 16, kernel_size)        # conv1: Conv1d(16, 4, k, pad=k//2)
    w2, b2 = conv_init(k3, k4, 1, 4, kernel_size - 2)     # conv2: Conv1d(4, 1, k-2, pad=(k-2)//2)
    return {"w1": w1, "b1": b1, "w2": w2, "b2": b2}


def _reference_forward(x, params, kernel_size):
    """Pure-JAX (XLA) reference matching PyTorch CNNDecoder.forward in eval mode."""
    def conv1d(inp, w, b, pad):
        dn = jax.lax.conv_dimension_numbers(inp.shape, w.shape, ("NCH", "OIH", "NCH"))
        y = jax.lax.conv_general_dilated(inp, w, window_strides=(1,),
                                         padding=[(pad, pad)], dimension_numbers=dn)
        return y + b[None, :, None]

    out = jax.nn.relu(conv1d(x, params["w1"], params["b1"], kernel_size // 2))
    out = jnp.repeat(out, 5, axis=-1)
    out = jax.nn.relu(conv1d(out, params["w2"], params["b2"], (kernel_size - 2) // 2))
    out = jnp.repeat(out, 3, axis=-1)
    return out


if __name__ == "__main__":
    kernel_size = 5          # odd, so padding=k//2 preserves length (as the module assumes)
    N, Cin, L = 2, 16, 16    # input is (batch, 16 channels, seq_len)

    key = jax.random.PRNGKey(0)
    kx, kp = jax.random.split(key)
    x = jax.random.normal(kx, (N, Cin, L), dtype=jnp.float32)
    params = init_params(kp, kernel_size)

    out = cnn_decoder_forward(x, params, kernel_size)
    out = jax.block_until_ready(out)

    assert out.shape == (N, 1, 15 * L), out.shape
    assert out.dtype == jnp.float32
    assert bool(jnp.all(out >= 0.0))   # ReLU then nearest-upsample => non-negative

    ref = _reference_forward(x, params, kernel_size)
    assert bool(jnp.allclose(out, ref, atol=1e-4, rtol=1e-4)), float(jnp.max(jnp.abs(out - ref)))

    print("KERNEL_OK")
</pallas_src>

<mosaic_0001>
module attributes {stable_mosaic.version = 11 : i64} {
  func.func @_decoder_kernel(%arg0: i32, %arg1: memref<1x16x20xf32, #tpu.memory_space<vmem>>, %arg2: memref<4x80xf32, #tpu.memory_space<vmem>>, %arg3: memref<4x1xf32, #tpu.memory_space<vmem>>, %arg4: memref<12xf32, #tpu.memory_space<smem>>, %arg5: memref<1xf32, #tpu.memory_space<smem>>, %arg6: memref<1x1x240xf32, #tpu.memory_space<vmem>>) attributes {dimension_semantics = [#tpu.dimension_semantics<parallel>], iteration_bounds = array<i64: 2>, scalar_prefetch = 0 : i64, scratch_operands = 0 : i64, tpu.core_type = #tpu.core_type<tc>, window_params = [{transform_indices = @transform_0, window_bounds = array<i64: 1, 16, 20>}, {pipeline_mode = #tpu.pipeline_mode<synchronous>, transform_indices = @transform_1, window_bounds = array<i64: 4, 80>}, {pipeline_mode = #tpu.pipeline_mode<synchronous>, transform_indices = @transform_2, window_bounds = array<i64: 4, 1>}, {transform_indices = @transform_3, window_bounds = array<i64: 12>}, {transform_indices = @transform_4, window_bounds = array<i64: 1>}, {transform_indices = @transform_5, window_bounds = array<i64: 1, 1, 240>}]} {
    %c0 = arith.constant 0 : index
    %c0_0 = arith.constant 0 : index
    %c0_1 = arith.constant 0 : index
    %0 = vector.load %arg1[%c0, %c0_0, %c0_1] : memref<1x16x20xf32, #tpu.memory_space<vmem>>, vector<1x16x20xf32>
    %1 = vector.shape_cast %0 : vector<1x16x20xf32> to vector<16x20xf32>
    %2 = vector.extract_strided_slice %1 {offsets = [0, 0], sizes = [16, 16], strides = [1, 1]} : vector<16x20xf32> to vector<16x16xf32>
    %3 = vector.extract_strided_slice %1 {offsets = [0, 1], sizes = [16, 16], strides = [1, 1]} : vector<16x20xf32> to vector<16x16xf32>
    %4 = vector.extract_strided_slice %1 {offsets = [0, 2], sizes = [16, 16], strides = [1, 1]} : vector<16x20xf32> to vector<16x16xf32>
    %5 = vector.extract_strided_slice %1 {offsets = [0, 3], sizes = [16, 16], strides = [1, 1]} : vector<16x20xf32> to vector<16x16xf32>
    %6 = vector.extract_strided_slice %1 {offsets = [0, 4], sizes = [16, 16], strides = [1, 1]} : vector<16x20xf32> to vector<16x16xf32>
    %7 = tpu.concatenate %2, %3, %4, %5, %6 in 0 : vector<16x16xf32>, vector<16x16xf32>, vector<16x16xf32>, vector<16x16xf32>, vector<16x16xf32> -> vector<80x16xf32>
    %c0_2 = arith.constant 0 : index
    %c0_3 = arith.constant 0 : index
    %8 = vector.load %arg2[%c0_2, %c0_3] : memref<4x80xf32, #tpu.memory_space<vmem>>, vector<4x80xf32>
    %cst = arith.constant dense<0.000000e+00> : vector<4x16xf32>
    %9 = tpu.matmul %8, %7, %cst {dimension_numbers = #tpu.dot_dimension_numbers<[1], [0], [0], [1], [0, 0, 1, 1], [], []>} : vector<4x80xf32>, vector<80x16xf32>, vector<4x16xf32> -> vector<4x16xf32>
    %c0_4 = arith.constant 0 : index
    %c0_5 = arith.constant 0 : index
    %10 = vector.load %arg3[%c0_4, %c0_5] : memref<4x1xf32, #tpu.memory_space<vmem>>, vector<4x1xf32>
    %11 = vector.broadcast %10 : vector<4x1xf32> to vector<4x16xf32>
    %12 = arith.addf %9, %11 : vector<4x16xf32>
    %cst_6 = arith.constant 0.000000e+00 : f32
    %13 = vector.broadcast %cst_6 : f32 to vector<4x16xf32>
    %14 = arith.maximumf %12, %13 : vector<4x16xf32>
    %15 = tpu.iota {dimensions = array<i32: 0>} : vector<16x82xi32>
    %16 = tpu.iota {dimensions = array<i32: 1>} : vector<16x82xi32>
    %c5_i32 = arith.constant 5 : i32
    %17 = vector.broadcast %c5_i32 : i32 to vector<16x82xi32>
    %18 = arith.muli %17, %15 : vector<16x82xi32>
    %c1_i32 = arith.constant 1 : i32
    %19 = vector.broadcast %c1_i32 : i32 to vector<16x82xi32>
    %20 = arith.addi %19, %18 : vector<16x82xi32>
    %21 = arith.cmpi sge, %16, %20 : vector<16x82xi32>
    %c5_i32_7 = arith.constant 5 : i32
    %22 = vector.broadcast %c5_i32_7 : i32 to vector<16x82xi32>
    %23 = arith.addi %20, %22 : vector<16x82xi32>
    %24 = arith.cmpi slt, %16, %23 : vector<16x82xi32>
    %25 = arith.andi %21, %24 : vector<16x82xi1>
    %26 = arith.extui %25 : vector<16x82xi1> to vector<16x82xi32>
    %27 = arith.sitofp %26 : vector<16x82xi32> to vector<16x82xf32>
    %cst_8 = arith.constant dense<0.000000e+00> : vector<4x82xf32>
    %28 = tpu.matmul %14, %27, %cst_8 {dimension_numbers = #tpu.dot_dimension_numbers<[1], [0], [0], [1], [0, 0, 1, 1], [], []>} : vector<4x16xf32>, vector<16x82xf32>, vector<4x82xf32> -> vector<4x82xf32>
    %cst_9 = arith.constant 0.000000e+00 : f32
    %29 = vector.broadcast %cst_9 : f32 to vector<1x80xf32>
    %c0_10 = arith.constant 0 : index
    %30 = memref.load %arg4[%c0_10] : memref<12xf32, #tpu.memory_space<smem>>
    %31 = vector.extract_strided_slice %28 {offsets = [0, 0], sizes = [1, 80], strides = [1, 1]} : vector<4x82xf32> to vector<1x80xf32>
    %32 = vector.broadcast %30 : f32 to vector<1x80xf32>
    %33 = arith.mulf %32, %31 : vector<1x80xf32>
    %34 = arith.addf %29, %33 : vector<1x80xf32>
    %c1 = arith.constant 1 : index
    %35 = memref.load %arg4[%c1] : memref<12xf32, #tpu.memory_space<smem>>
    %36 = vector.extract_strided_slice %28 {offsets = [0, 1], sizes = [1, 80], strides = [1, 1]} : vector<4x82xf32> to vector<1x80xf32>
    %37 = vector.broadcast %35 : f32 to vector<1x80xf32>
    %38 = arith.mulf %37, %36 : vector<1x80xf32>
    %39 = arith.addf %34, %38 : vector<1x80xf32>
    %c2 = arith.constant 2 : index
    %40 = memref.load %arg4[%c2] : memref<12xf32, #tpu.memory_space<smem>>
    %41 = vector.extract_strided_slice %28 {offsets = [0, 2], sizes = [1, 80], strides = [1, 1]} : vector<4x82xf32> to vector<1x80xf32>
    %42 = vector.broadcast %40 : f32 to vector<1x80xf32>
    %43 = arith.mulf %42, %41 : vector<1x80xf32>
    %44 = arith.addf %39, %43 : vector<1x80xf32>
    %c3 = arith.constant 3 : index
    %45 = memref.load %arg4[%c3] : memref<12xf32, #tpu.memory_space<smem>>
    %46 = vector.extract_strided_slice %28 {offsets = [1, 0], sizes = [1, 80], strides = [1, 1]} : vector<4x82xf32> to vector<1x80xf32>
    %47 = vector.broadcast %45 : f32 to vector<1x80xf32>
    %48 = arith.mulf %47, %46 : vector<1x80xf32>
    %49 = arith.addf %44, %48 : vector<1x80xf32>
    %c4 = arith.constant 4 : index
    %50 = memref.load %arg4[%c4] : memref<12xf32, #tpu.memory_space<smem>>
    %51 = vector.extract_strided_slice %28 {offsets = [1, 1], sizes = [1, 80], strides = [1, 1]} : vector<4x82xf32> to vector<1x80xf32>
    %52 = vector.broadcast %50 : f32 to vector<1x80xf32>
    %53 = arith.mulf %52, %51 : vector<1x80xf32>
    %54 = arith.addf %49, %53 : vector<1x80xf32>
    %c5 = arith.constant 5 : index
    %55 = memref.load %arg4[%c5] : memref<12xf32, #tpu.memory_space<smem>>
    %56 = vector.extract_strided_slice %28 {offsets = [1, 2], sizes = [1, 80], strides = [1, 1]} : vector<4x82xf32> to vector<1x80xf32>
    %57 = vector.broadcast %55 : f32 to vector<1x80xf32>
    %58 = arith.mulf %57, %56 : vector<1x80xf32>
    %59 = arith.addf %54, %58 : vector<1x80xf32>
    %c6 = arith.constant 6 : index
    %60 = memref.load %arg4[%c6] : memref<12xf32, #tpu.memory_space<smem>>
    %61 = vector.extract_strided_slice %28 {offsets = [2, 0], sizes = [1, 80], strides = [1, 1]} : vector<4x82xf32> to vector<1x80xf32>
    %62 = vector.broadcast %60 : f32 to vector<1x80xf32>
    %63 = arith.mulf %62, %61 : vector<1x80xf32>
    %64 = arith.addf %59, %63 : vector<1x80xf32>
    %c7 = arith.constant 7 : index
    %65 = memref.load %arg4[%c7] : memref<12xf32, #tpu.memory_space<smem>>
    %66 = vector.extract_strided_slice %28 {offsets = [2, 1], sizes = [1, 80], strides = [1, 1]} : vector<4x82xf32> to vector<1x80xf32>
    %67 = vector.broadcast %65 : f32 to vector<1x80xf32>
    %68 = arith.mulf %67, %66 : vector<1x80xf32>
    %69 = arith.addf %64, %68 : vector<1x80xf32>
    %c8 = arith.constant 8 : index
    %70 = memref.load %arg4[%c8] : memref<12xf32, #tpu.memory_space<smem>>
    %71 = vector.extract_strided_slice %28 {offsets = [2, 2], sizes = [1, 80], strides = [1, 1]} : vector<4x82xf32> to vector<1x80xf32>
    %72 = vector.broadcast %70 : f32 to vector<1x80xf32>
    %73 = arith.mulf %72, %71 : vector<1x80xf32>
    %74 = arith.addf %69, %73 : vector<1x80xf32>
    %c9 = arith.constant 9 : index
    %75 = memref.load %arg4[%c9] : memref<12xf32, #tpu.memory_space<smem>>
    %76 = vector.extract_strided_slice %28 {offsets = [3, 0], sizes = [1, 80], strides = [1, 1]} : vector<4x82xf32> to vector<1x80xf32>
    %77 = vector.broadcast %75 : f32 to vector<1x80xf32>
    %78 = arith.mulf %77, %76 : vector<1x80xf32>
    %79 = arith.addf %74, %78 : vector<1x80xf32>
    %c10 = arith.constant 10 : index
    %80 = memref.load %arg4[%c10] : memref<12xf32, #tpu.memory_space<smem>>
    %81 = vector.extract_strided_slice %28 {offsets = [3, 1], sizes = [1, 80], strides = [1, 1]} : vector<4x82xf32> to vector<1x80xf32>
    %82 = vector.broadcast %80 : f32 to vector<1x80xf32>
    %83 = arith.mulf %82, %81 : vector<1x80xf32>
    %84 = arith.addf %79, %83 : vector<1x80xf32>
    %c11 = arith.constant 11 : index
    %85 = memref.load %arg4[%c11] : memref<12xf32, #tpu.memory_space<smem>>
    %86 = vector.extract_strided_slice %28 {offsets = [3, 2], sizes = [1, 80], strides = [1, 1]} : vector<4x82xf32> to vector<1x80xf32>
    %87 = vector.broadcast %85 : f32 to vector<1x80xf32>
    %88 = arith.mulf %87, %86 : vector<1x80xf32>
    %89 = arith.addf %84, %88 : vector<1x80xf32>
    %c0_11 = arith.constant 0 : index
    %90 = memref.load %arg5[%c0_11] : memref<1xf32, #tpu.memory_space<smem>>
    %91 = vector.broadcast %90 : f32 to vector<1x80xf32>
    %92 = arith.addf %89, %91 : vector<1x80xf32>
    %cst_12 = arith.constant 0.000000e+00 : f32
    %93 = vector.broadcast %cst_12 : f32 to vector<1x80xf32>
    %94 = arith.maximumf %92, %93 : vector<1x80xf32>
    %95 = tpu.iota {dimensions = array<i32: 0>} : vector<80x240xi32>
    %96 = tpu.iota {dimensions = array<i32: 1>} : vector<80x240xi32>
    %c3_i32 = arith.constant 3 : i32
    %97 = vector.broadcast %c3_i32 : i32 to vector<80x240xi32>
    %98 = arith.muli %97, %95 : vector<80x240xi32>
    %99 = arith.cmpi sge, %96, %98 : vector<80x240xi32>
    %c3_i32_13 = arith.constant 3 : i32
    %100 = vector.broadcast %c3_i32_13 : i32 to vector<80x240xi32>
    %101 = arith.addi %98, %100 : vector<80x240xi32>
    %102 = arith.cmpi slt, %96, %101 : vector<80x240xi32>
    %103 = arith.andi %99, %102 : vector<80x240xi1>
    %104 = arith.extui %103 : vector<80x240xi1> to vector<80x240xi32>
    %105 = arith.sitofp %104 : vector<80x240xi32> to vector<80x240xf32>
    %cst_14 = arith.constant dense<0.000000e+00> : vector<1x240xf32>
    %106 = tpu.matmul %94, %105, %cst_14 {dimension_numbers = #tpu.dot_dimension_numbers<[1], [0], [0], [1], [0, 0, 1, 1], [], []>} : vector<1x80xf32>, vector<80x240xf32>, vector<1x240xf32> -> vector<1x240xf32>
    %c0_15 = arith.constant 0 : index
    %c0_16 = arith.constant 0 : index
    %c0_17 = arith.constant 0 : index
    %107 = vector.load %arg6[%c0_15, %c0_16, %c0_17] : memref<1x1x240xf32, #tpu.memory_space<vmem>>, vector<1x1x240xf32>
    %108 = vector.shape_cast %107 : vector<1x1x240xf32> to vector<1x240xf32>
    %109 = vector.shape_cast %106 : vector<1x240xf32> to vector<1x1x240xf32>
    tpu.vector_store %arg6[%c0_15, %c0_16, %c0_17], %109 {strides = array<i32>} : memref<1x1x240xf32, #tpu.memory_space<vmem>>, vector<1x1x240xf32>,
    return
  }
  func.func @transform_0(%arg0: i32) -> (i32, i32, i32) {
    %c0_i32 = arith.constant 0 : i32
    %c0_i32_0 = arith.constant 0 : i32
    %c0_i32_1 = arith.constant 0 : i32
    return %arg0, %c0_i32, %c0_i32_0 : i32, i32, i32
  }
  func.func @transform_1(%arg0: i32) -> (i32, i32) {
    %c0_i32 = arith.constant 0 : i32
    %c0_i32_0 = arith.constant 0 : i32
    %c0_i32_1 = arith.constant 0 : i32
    return %c0_i32, %c0_i32_0 : i32, i32
  }
  func.func @transform_2(%arg0: i32) -> (i32, i32) {
    %c0_i32 = arith.constant 0 : i32
    %c0_i32_0 = arith.constant 0 : i32
    %c0_i32_1 = arith.constant 0 : i32
    return %c0_i32, %c0_i32_0 : i32, i32
  }
  func.func @transform_3(%arg0: i32) -> i32 {
    %c0_i32 = arith.constant 0 : i32
    %c0_i32_0 = arith.constant 0 : i32
    return %c0_i32 : i32
  }
  func.func @transform_4(%arg0: i32) -> i32 {
    %c0_i32 = arith.constant 0 : i32
    %c0_i32_0 = arith.constant 0 : i32
    return %c0_i32 : i32
  }
  func.func @transform_5(%arg0: i32) -> (i32, i32, i32) {
    %c0_i32 = arith.constant 0 : i32
    %c0_i32_0 = arith.constant 0 : i32
    %c0_i32_1 = arith.constant 0 : i32
    return %arg0, %c0_i32, %c0_i32_0 : i32, i32, i32
  }
}

</mosaic_0001>

<bundles_post_ra>
// kernel: tpu_custom_call.1
= control target key start
LH: loop header
LB: loop body
LE: loop exit
PB: predicated region body
PF: predicated region fallthrough
CT: control target
= control target key end

     0   :  { %s1574_s0 = inlined_call_operand.hbm [shape: f32[2,16,20], index: 0, kind: input, shape index: {}]   ;;  %s1575_s1 = inlined_call_operand.vmem [shape: f32[4,80], index: 1, kind: input, shape index: {}]   ;;  %s1576_s2 = inlined_call_operand.vmem [shape: f32[4,1], index: 2, kind: input, shape index: {}]   ;;  %s1577_s3 = inlined_call_operand.vmem [shape: f32[12], index: 3, kind: input, shape index: {}]   ;;  %s1578_s4 = inlined_call_operand.<no memory space> [shape: f32[1], index: 4, kind: input, shape index: {}]   ;;  %s1579_s5 = inlined_call_operand.hbm [shape: f32[2,1,240], index: 5, kind: output, shape index: {}]  }
   0x1   :  { %10 = sst [smem:[#allocation2]] %s1578_s4 }
   0x2   :  { %11 = vsyncpa [#allocation4], 0 }
   0x3   :  { %13 = vsyncpa [#allocation4 + $0x1], 0 }
   0x4   :  { %14 = vsyncpa [#allocation6], 0 }
   0x5   :  { %15 = vsyncpa [#allocation5], 0 }
   0x6   :  { %17 = vsyncpa [#allocation5 + $0x1], 0  ;;  %s1234_s20 = smov 0   ;;  %s1236_s21 = smov 0  }
   0x7   :  { %s1238_s22 = smov 0   ;;  %s1240_s23 = smov 0  }
   0x8 LB: > { %s1255_s4 = sadd.s32 4294967295, %s1185_s23   ;;  %s885_s24 = sadd.s32 4294967294, %s1185_s23   ;;  %s1185_s23 = sphi %s1240_s23, %s1603_s23   ;;  %s1181_s22 = sphi %s1238_s22, %s1602_s22   ;;  %s1177_s21 = sphi %s1236_s21, %s1601_s21   ;;  %s1173_s20 = sphi %s1234_s20, %s1600_s20  }
   0x9   : > { %s1259_s25 = sadd.s32 1, %s1185_s23   ;;  %s30_s26 = sadd.s32 1, %s1181_s22 }
   0xa   : > { %s27_s27 = ssub.s32 %s1185_s23, %s1259_s25  ;;  %p37_p0 = scmp.ne.s32.totalorder %s1181_s22, %s1177_s21 }
   0xb   : > { %p28_p1 = scmp.eq.s32.totalorder %s27_s27, 0  ;;  %p38_p2 = scmp.eq.s32.totalorder %s1185_s23, 0 }
   0xc   : > { %p43_p3 = scmp.ne.s32.totalorder %s1177_s21, %s1173_s20  ;;  %p1581_p4 = scmp.eq.s32.totalorder %s1255_s4, 0 }
   0xd   : > { %s1271_s28 = scalar_select %p28_p1, %s1181_s22, %s30_s26  }
   0xe   : > { %p1273_p5 = por %p38_p2, %p37_p0  ;;  %p1279_p6 = por %p1581_p4, %p43_p3 }
   0xf   : > { %p151_p7 = scmp.eq.s32.totalorder %s1255_s4, 1  ;;  %p157_p8 = scmp.eq.s32.totalorder %s885_s24, 1 }
  0x10   : > { %s1586_s30 = scalar_select %p1279_p6, 1, 0 }
  0x11   : > { %p886_p9 = scmp.ge.s32.totalorder %s1185_s23, 1  ;;  %p164_p10 = scmp.lt.s32.totalorder %s1185_s23, 3 }
  0x12   : > { %p1286_p11 = por %p151_p7, %p37_p0  ;;  %p1290_p12 = por %p157_p8, %p43_p3 }
  0x13   : > { %p1294_p13 = pnand %p886_p9, %p164_p10  ;;  %s183_s11 = sshll.u32 %s1577_s3, 4  ;;  %s184_s11 = int_to_ptr.vmem [resolvable:$true] %s183_s11 }
  0x14   : > { %s1587_s6 = scalar_select %p1286_p11, 1, 0 }
  0x15   : > { %s1588_s7 = scalar_select %p1290_p12, 1, 0 }
  0x16   : > { %s1589_s8 = scalar_select %p1294_p13, 1, 0 }
  0x17   : > { %p1013_p1 = pneg %p1294_p13  ;;  %p1026_p2 = scmp.lt.s32.totalorder %s1185_s23, 2 }
  0x18   : > { %s197_s13 = sand.u32 1, %s1181_s22   ;;  %s1074_s16 = scalar_lea.vmem %s184_s11, 16 }
  0x19   : > { %p1307_p7 = pnand %p1013_p1, %p1581_p4  ;;  %p1314_p3 = pnand %p1026_p2, %p1273_p5 }
  0x1a   : > { %s889_s15 = sshll.u32 %s197_s13, 4  ;;  %p1075_p8 = scmp.ne.s32.totalorder %s184_s11, %s1074_s16 }
  0x1b   : > { %p1076_p9 = pneg %p1307_p7  ;;  %p1082_p12 = scmp.lt.s32.totalorder %s184_s11, %s184_s11 }
  0x1c   : > { %p1083_p11 = scmp.lt.s32.totalorder %s1074_s16, %s1074_s16 }
  0x1d   : > { %p1077_p10 = pnand %p1076_p9, %p1075_p8 }
  0x1e   : > { %p1084_p1 = por %p1083_p11, %p1082_p12 }
  0x1f   : > { %p1078_p0 = pneg %p1077_p10 }
  0x21   : > { %p1085_p4 = pnand %p1084_p1, %p1078_p0 }
  0x23   : > { %1088 = shalt.err (!%p1085_p4)
}
  0x24   : > { %s1187_s17 = smov [#allocation7]   ;;  %s959_s18 = sshll.u32 %s1185_s23, 8 }
  0x25   : > { %1016 = dma.vmem_to_smem (!%p1307_p7), %s184_s11, 16, %s1187_s17, [#allocation6]  }
  0x26   : > { %s201_s19 = scalar_lea.vmem [#allocation3], %s889_s15  ;;  %s1326_s29 = scalar_lea.hbm %s1574_s0, %s959_s18 }
  0x27   : > { %s208_s24 = sshll.u32 %s201_s19, 4  ;;  %s1330_s9 = scalar_lea.sflag [#allocation4], %s197_s13  ;;  %s1328_s24 = int_to_ptr.vmem [resolvable:$true] %s208_s24 }
  0x28   : > { %s1089_s10 = scalar_lea.hbm %s1326_s29, 256  ;;  %p1091_p5 = pneg %p1314_p3 }
  0x29   : > { %p1090_p4 = scmp.ne.s32.totalorder %s1326_s29, %s1089_s10  ;;  %s1094_s15 = scalar_lea.hbm %s1574_s0, 512 }
  0x2a   : > { %p1095_p0 = scmp.lt.s32.totalorder %s1326_s29, %s1574_s0  ;;  %p1096_p2 = scmp.lt.s32.totalorder %s1094_s15, %s1089_s10 }
  0x2b   : > { %p1092_p11 = pnand %p1091_p5, %p1090_p4 }
  0x2c   : > { %p1097_p7 = por %p1096_p2, %p1095_p0 }
  0x2d   : > { %p1093_p12 = pneg %p1092_p11 }
  0x2f   : > { %p1098_p8 = pnand %p1097_p7, %p1093_p12 }
  0x31   : > { %1101 = shalt.err (!%p1098_p8)
}
  0x32   : > { %s1102_s13 = scalar_lea.vmem %s1328_s24, 256  ;;  %s1188_s18 = smov [#allocation3]  }
  0x33   : > { %p1103_p9 = scmp.ne.s32.totalorder %s1328_s24, %s1102_s13  ;;  %s1107_s19 = sshll.u32 %s1188_s18, 4  ;;  %s1108_s19 = int_to_ptr.vmem [resolvable:$false] %s1107_s19 }
  0x34   : > { %s1109_s26 = scalar_lea.vmem %s1108_s19, 512  ;;  %p1110_p4 = scmp.lt.s32.totalorder %s1328_s24, %s1108_s19 }
  0x35   : > { %p1105_p10 = pnand %p1103_p9, %p1091_p5  ;;  %p1111_p11 = scmp.lt.s32.totalorder %s1109_s26, %s1102_s13 }
  0x37   : > { %p1106_p1 = pneg %p1105_p10  ;;  %p1112_p6 = por %p1111_p11, %p1110_p4 }
  0x39   : > { %p1113_p13 = pnand %p1112_p6, %p1106_p1 }
  0x3b   : > { %1116 = shalt.err (!%p1113_p13)
}
  0x3c   : > { %s1189_s27 = smov 128   ;;  %s1190_s10 = smov 8  }
  0x3d   : > { %1020 = dma.hbm_to_vmem [thread:$0]  (!%p1314_p3), %s1326_s29, 256, %s1328_s24, %s1330_s9, %s1189_s27, %s1189_s27, %s1190_s10  }
  0x3e   : > { %p1592_p5 = scmp.ne.s32.totalorder %s1589_s8, 0 }
  0x3f   : > { %s1354_s11 = sand.u32 (!%p1592_p5), 1, %s1177_s21   ;;  %p1593_p6 = scmp.ne.s32.totalorder (!%p1592_p5), %s1586_s30, 0 }
  0x40   : > { %220 = sbr.rel (%p1592_p5) target bundleno = 962 (0x3c2), region = 40  ;;  %s893_s12 = sshll.u32 (!%p1592_p5), %s1354_s11, 4 }
  0x41   : > { %s223_s15 = scalar_lea.sflag (!%p1592_p5), [#allocation4], %s1354_s11  ;;  %s226_s16 = scalar_lea.vmem (!%p1592_p5), [#allocation3], %s893_s12 }
  0x45   : > { %1160 = dma.done.wait (%p1593_p6), %s223_s15, 256  }
  0x46   : > { %1162 = vsyncadd (%p1593_p6), %s223_s15, 4294967040  ;;  %p1594_p13 = scmp.eq.s32.totalorder %s1255_s4, 0 }
  0x48   : > { %1164 = dma.done.wait (%p1594_p13), [#allocation6], 16   ;;  %p1595_p3 = pmov %p1594_p13 }
  0x4a   : > { %1166 = vsyncadd (%p1595_p3), [#allocation6], 4294967280 }
  0x4b   : > { %235 = sfence }
  0x4c   : > { %v259_v0 = vld [vmem:[%s226_s16 + $0x8] sm:$0xff]  ;;  %s1191_s8 = smov 124   ;;  %s1192_s14 = smov 125   ;;  %v258_v1 = vld [vmem:[%s226_s16] sm:$0xff]  ;;  %v1193_v2 = vmov 0.0   ;;  %vm1194_vm0 = vmmov 0   ;;  %v368_v14 = vlaneseq }
  0x4d   : > { %282 = vrot.lane.b32.xlu0 %v259_v0, %s1191_s8  ;;  %276 = vrot.lane.b32.xlu1 %v259_v0, %s1192_s14  ;;  %s1195_s30 = smov 126   ;;  %v1196_v3 = vmov 0   ;;  %s1197_s24 = smov 127   ;;  %v287_v4 = vld [vmem:[%s1576_s2] sm:$0xf]  ;;  %vm1584_vm1 = vcmask 654336  }
  0x4e   : > { %975 = vmatprep.subr.mxu0 %v1193_v2  ;;  %998 = vmatprep.subr.mxu1 %v1193_v2  ;;  %v286_v13 = vld [vmem:[%s1575_s1] sm:$0xf]  ;;  %v1391_v15 = vshrl.u32 %v368_v14, 7  ;;  %v1399_v20 = vand.u32 127, %v368_v14  ;;  %v1198_v24 = vmov 1.0   ;;  %vm389_vm8 = vcmask 130048  }
  0x4f   : > { %995 = vmatprep.mubr.msk.f32.mxu0 %vm1194_vm0, %v1193_v2  ;;  %1002 = vmatprep.mubr.msk.f32.mxu1 %vm1194_vm0, %v1193_v2  ;;  %s902_s18 = sld [smem:[#allocation7 + $0x1]]  ;;  %s895_s9 = sshll.u32 %s1354_s11, 1 }
  0x50   : > { %1073 = vset.pattern.permute.xlu0 %v1196_v3  ;;  %v1394_v16 = vadd.s32 8, %v1391_v15  ;;  %v373_v19 = vmul.u32 5, %v1391_v15  ;;  %s905_s19 = sld [smem:[#allocation7 + $0x4]]  ;;  %v569_v30 = vadd.s32 72, %v1391_v15  ;;  %v568_v32 = vadd.s32 64, %v1391_v15  ;;  %s960_s17 = sshll.u32 %s1255_s4, 5 }
  0x51   : > { %280 = vrot.lane.b32.xlu0 %v258_v1, %s1191_s8  ;;  %274 = vrot.lane.b32.xlu1 %v258_v1, %s1192_s14  ;;  %s1409_s26 = sld [smem:[#allocation7 + $0x2]]  ;;  %v1422_v35 = vadd.s32 128, %v1399_v20  ;;  %v567_v48 = vadd.s32 56, %v1391_v15  ;;  %v566_v57 = vadd.s32 48, %v1391_v15  ;;  %v565_v58 = vadd.s32 40, %v1391_v15  ;;  %s257_s13 = scalar_lea.vmem [#allocation8], %s895_s9 }
  0x52   : > { %v374_v17 = vmul.u32 5, %v1394_v16  ;;  %v375_v22 = vadd.s32 1, %v373_v19  ;;  %s908_s27 = sld [smem:[#allocation7 + $0x7]]  ;;  %v580_v31 = vmul.u32 3, %v569_v30  ;;  %v564_v59 = vadd.s32 32, %v1391_v15  ;;  %p1597_p0 = scmp.ne.s32.totalorder %s1587_s6, 0 }
  0x53   : > { %s1411_s10 = sld [smem:[#allocation7 + $0x5]]  ;;  %v579_v37 = vmul.u32 3, %v568_v32  ;;  %v578_v56 = vmul.u32 3, %v567_v48  ;;  %v563_v60 = vadd.s32 24, %v1391_v15 }
  0x54   : > { %v376_v18 = vadd.s32 1, %v374_v17  ;;  %v379_v23 = vadd.s32 5, %v375_v22  ;;  %vm377_vm5 = vcmp.ge.s32.totalorder %v1399_v20, %v375_v22  ;;  %s1413_s12 = sld [smem:[#allocation7 + $0xa]]  ;;  %v610_v36 = vadd.s32 3, %v580_v31 }
  0x55   : > { %270 = vrot.lane.b32.xlu0 %v259_v0, %s1195_s30  ;;  %268 = vrot.lane.b32.xlu1 %v258_v1, %s1195_s30  ;;  %s1416_s15 = sld [smem:[#allocation7 + $0x8]]  ;;  %v468_v33 = vstv %s902_s18  ;;  %vm600_vm9 = vcmp.ge.s32.totalorder %v1422_v35, %v580_v31  ;;  %v609_v45 = vadd.s32 3, %v579_v37  ;;  %vm599_vm12 = vcmp.ge.s32.totalorder %v1399_v20, %v580_v31  ;;  %s803_s18 = sshll.u32 %s257_s13, 4  ;;  %s804_s18 = int_to_ptr.vmem [resolvable:$true] %s803_s18 }
  0x56   : > { %v380_v21 = vadd.s32 5, %v376_v18  ;;  %vm378_vm2 = vcmp.ge.s32.totalorder %v1399_v20, %v376_v18  ;;  %vm381_vm6 = vcmp.lt.s32.totalorder %v1399_v20, %v379_v23  ;;  %s1418_s16 = sld [smem:[#allocation7 + $0xb]]  ;;  %v491_v34 = vstv %s905_s19 }
  0x57   : > { %vm383_vm7 = vmand %vm377_vm5, %vm381_vm6  ;;  %vm630_vm10 = vcmp.lt.s32.totalorder %v1422_v35, %v610_v36  ;;  %v476_v43 = vstv %s1409_s26  ;;  %vm629_vm13 = vcmp.lt.s32.totalorder %v1399_v20, %v610_v36  ;;  %vm598_vm15 = vcmp.ge.s32.totalorder %v1422_v35, %v579_v37  ;;  %s463_s8 = sld [smem:[#allocation7]] }
  0x58   : > { %vm382_vm3 = vcmp.lt.s32.totalorder %v1399_v20, %v380_v21  ;;  %v516_v39 = vstv %s908_s27  ;;  %vm650_vm11 = vmand %vm600_vm9, %vm630_vm10  ;;  %vm628_vm0 = vcmp.lt.s32.totalorder %v1422_v35, %v609_v45  ;;  %vm596_vm6 = vcmp.ge.s32.totalorder %v1422_v35, %v578_v56  ;;  %s904_s14 = sld [smem:[#allocation7 + $0x3]]  ;;  %s801_s27 = scalar_lea.hbm %s1579_s5, %s960_s17 }
  0x59   : > { %264 = vrot.lane.b32.xlu0 %v259_v0, %s1197_s24  ;;  %262 = vrot.lane.b32.xlu1 %v258_v1, %s1197_s24  ;;  %vm384_vm4 = vmand %vm378_vm2, %vm382_vm3  ;;  %v500_v44 = vstv %s1411_s10  ;;  %vm597_vm2 = vcmp.ge.s32.totalorder %v1399_v20, %v579_v37  ;;  %vm627_vm3 = vcmp.lt.s32.totalorder %v1399_v20, %v609_v45  ;;  %v608_v63 = vadd.s32 3, %v578_v56  ;;  %s558_s29 = sld [smem:[#allocation2]]  ;;  %s789_s10 = scalar_lea.sflag [#allocation5], %s1354_s11 }
  0x5a   : > { %999 = vmatpush3.msk.msra.mxu1 %vm384_vm4, %v1198_v24  ;;  %v541_v49 = vstv %s1413_s12  ;;  %vm649_vm14 = vmand %vm599_vm12, %vm629_vm13  ;;  %v572_v17 = vmul.u32 3, %v1394_v16  ;;  %v571_v18 = vmul.u32 3, %v1391_v15  ;;  %s1117_s12 = scalar_lea.vmem %s804_s18, 32 }
  0x5b   : > { %1000 = vmatprep.subr.mxu1 %v1193_v2  ;;  %v525_v50 = vstv %s1416_s15  ;;  %vm648_vm4 = vmand %vm598_vm15, %vm628_vm0  ;;  %vm625_vm9 = vcmp.lt.s32.totalorder %v1399_v20, %v608_v63  ;;  %p1118_p12 = scmp.ne.s32.totalorder %s804_s18, %s1117_s12  ;;  %s1200_s15 = smov [#allocation8]  }
  0x5c   : > { %1001 = vmatpush3.msk.msra.mxu1 %vm383_vm7, %v1198_v24  ;;  %v550_v51 = vstv %s1418_s16  ;;  %vm647_vm5 = vmand %vm597_vm2, %vm627_vm3  ;;  %vm595_vm7 = vcmp.ge.s32.totalorder %v1399_v20, %v578_v56  ;;  %v602_v16 = vadd.s32 3, %v572_v17  ;;  %v601_v21 = vadd.s32 3, %v571_v18  ;;  %s1121_s4 = sshll.u32 %s1200_s15, 4  ;;  %s1122_s4 = int_to_ptr.vmem [resolvable:$false] %s1121_s4 }
  0x5d   : > { %290 = vperm.xlu0 %1073, %v287_v4   ;;  %933 = vmatprep.subr.msk.mxu1 %vm650_vm11, %v1198_v24  ;;  %v575_v4 = vmul.u32 3, %v564_v59  ;;  %vm645_vm12 = vmand %vm595_vm7, %vm625_vm9  ;;  %v464_v22 = vstv %s463_s8  ;;  %p1119_p2 = pnand %p1118_p12, %p1597_p0  ;;  %s1123_s16 = scalar_lea.vmem %s1122_s4, 64 }
  0x5e   : > { %v484_v23 = vstv %s904_s14  ;;  %p1124_p8 = scmp.lt.s32.totalorder %s804_s18, %s1122_s4  ;;  %p1125_p9 = scmp.lt.s32.totalorder %s1123_s16, %s1117_s12 }
  0x5f   : > { %vm590_vm7 = vcmp.ge.s32.totalorder %v1422_v35, %v575_v4  ;;  %p1120_p7 = pneg %p1119_p2 }
  0x60   : > { %p1126_p10 = por %p1125_p9, %p1124_p8 }
  0x62   : > { %p1127_p1 = pnand %p1126_p10, %p1120_p7 }
  0xbf   : > { %v283_v5 = vpop.permute.xlu0 %282  ;;  %v277_v6 = vpop.permute.xlu1 %276 }
  0xc0   : > { %976 = vmatpush3.msra.mxu0 %v283_v5 }
  0xc1   : > { %977 = vmatprep.subr.mxu0 %v1193_v2 }
  0xc3   : > { %v281_v7 = vpop.permute.xlu0 %280  ;;  %v275_v8 = vpop.permute.xlu1 %274 }
  0xc4   : > { %978 = vmatpush3.msra.mxu0 %v281_v7  ;;  %v562_v7 = vadd.s32 16, %v1391_v15 }
  0xc5   : > { %979 = vmatprep.subr.mxu0 %v1193_v2 }
  0xc6   : > { %980 = vmatpush3.msra.mxu0 %v277_v6  ;;  %v574_v6 = vmul.u32 3, %v563_v60 }
  0xc7   : > { %981 = vmatprep.subr.mxu0 %v1193_v2  ;;  %v271_v9 = vpop.permute.xlu0 %270  ;;  %v269_v10 = vpop.permute.xlu1 %268 }
  0xc8   : > { %982 = vmatpush3.msra.mxu0 %v275_v8 }
  0xc9   : > { %983 = vmatprep.subr.mxu0 %v1193_v2 }
  0xca   : > { %984 = vmatpush3.msra.mxu0 %v271_v9 }
  0xcb   : > { %985 = vmatprep.subr.mxu0 %v1193_v2  ;;  %v265_v11 = vpop.permute.xlu0 %264  ;;  %v263_v12 = vpop.permute.xlu1 %262 }
  0xcc   : > { %986 = vmatpush3.msra.mxu0 %v269_v10  ;;  %v605_v10 = vadd.s32 3, %v575_v4 }
  0xcd   : > { %987 = vmatprep.subr.mxu0 %v1193_v2 }
  0xce   : > { %988 = vmatpush3.msra.mxu0 %v265_v11 }
  0xcf   : > { %989 = vmatprep.subr.mxu0 %v1193_v2 }
  0xd0   : > { %990 = vmatpush3.msra.mxu0 %v263_v12  ;;  %v604_v12 = vadd.s32 3, %v574_v6 }
  0xd1   : > { %991 = vmatprep.subr.mxu0 %v1193_v2 }
  0xd2   : > { %992 = vmatpush3.msra.mxu0 %v259_v0 }
  0xd3   : > { %993 = vmatprep.subr.mxu0 %v1193_v2 }
  0xd4   : > { %994 = vmatpush3.msra.mxu0 %v258_v1  ;;  %v577_v1 = vmul.u32 3, %v566_v57 }
  0xd5   : > { %996 = vmatmul.mubr.msk.f32.vlgmr.msra.gmra.mxu0 %vm1584_vm1, %v286_v13  ;;  %v573_v13 = vmul.u32 3, %v562_v7  ;;  %vm612_vm1 = vcmp.lt.s32.totalorder %v1422_v35, %v601_v21 }
  0xd6   : > { %vm594_vm11 = vcmp.ge.s32.totalorder %v1422_v35, %v577_v1  ;;  %v607_v5 = vadd.s32 3, %v577_v1  ;;  %vm593_vm13 = vcmp.ge.s32.totalorder %v1399_v20, %v577_v1 }
  0xd7   : > { %v603_v19 = vadd.s32 3, %v573_v13 }
  0xd8   : > { %v291_v25 = vpop.permute.xlu0 %290  ;;  %vm623_vm15 = vcmp.lt.s32.totalorder %v1399_v20, %v607_v5 }
 0x195   : > { %v363_v26 = vpop.f32.mrf.mxu0 }
 0x196   : > { %v364_v27 = vadd.f32 %v363_v26, %v291_v25 }
 0x197   : > { %v997_v28 = vpop.f32.mrf.mxu0 }
 0x198   : > { %v367_v29 = vmax.f32 %v364_v27, 0.0 }
 0x19a   : > { %1003 = vmatmul.mubr.msk.f32.vlgmr.msra.gmra.mxu1 %vm389_vm8, %v367_v29  ;;  %vm626_vm8 = vcmp.lt.s32.totalorder %v1422_v35, %v608_v63 }
 0x19b   : > { %758 = vmatprep.mubr.f32.mxu1 %v1193_v2  ;;  %934 = vmatpush1.msk.msra.mxu1 %vm649_vm14, %v1198_v24  ;;  %v576_v2 = vmul.u32 3, %v565_v58  ;;  %vm646_vm10 = vmand %vm596_vm6, %vm626_vm8  ;;  %vm624_vm14 = vcmp.lt.s32.totalorder %v1422_v35, %v607_v5  ;;  %vm620_vm8 = vcmp.lt.s32.totalorder %v1422_v35, %v605_v10 }
 0x19c   : > { %935 = vmatprep.subr.msk.mxu1 %vm648_vm4, %v1198_v24  ;;  %vm644_vm2 = vmand %vm594_vm11, %vm624_vm14  ;;  %vm619_vm11 = vcmp.lt.s32.totalorder %v1399_v20, %v605_v10  ;;  %vm618_vm14 = vcmp.lt.s32.totalorder %v1422_v35, %v604_v12 }
 0x19d   : > { %936 = vmatpush1.msk.msra.mxu1 %vm647_vm5, %v1198_v24  ;;  %v606_v9 = vadd.s32 3, %v576_v2  ;;  %vm592_vm0 = vcmp.ge.s32.totalorder %v1422_v35, %v576_v2  ;;  %vm591_vm4 = vcmp.ge.s32.totalorder %v1399_v20, %v576_v2  ;;  %vm643_vm6 = vmand %vm593_vm13, %vm623_vm15  ;;  %vm588_vm13 = vcmp.ge.s32.totalorder %v1422_v35, %v574_v6 }
 0x19e   : > { %937 = vmatprep.subr.msk.mxu1 %vm646_vm10, %v1198_v24  ;;  %vm589_vm10 = vcmp.ge.s32.totalorder %v1399_v20, %v575_v4  ;;  %vm640_vm15 = vmand %vm590_vm7, %vm620_vm8  ;;  %vm585_vm7 = vcmp.ge.s32.totalorder %v1399_v20, %v573_v13  ;;  %vm615_vm8 = vcmp.lt.s32.totalorder %v1399_v20, %v603_v19 }
 0x19f   : > { %938 = vmatpush1.msk.msra.mxu1 %vm645_vm12, %v1198_v24  ;;  %vm622_vm3 = vcmp.lt.s32.totalorder %v1422_v35, %v606_v9  ;;  %vm621_vm5 = vcmp.lt.s32.totalorder %v1399_v20, %v606_v9 }
 0x1a0   : > { %939 = vmatprep.subr.msk.mxu1 %vm644_vm2, %v1198_v24  ;;  %vm642_vm9 = vmand %vm592_vm0, %vm622_vm3  ;;  %vm587_vm0 = vcmp.ge.s32.totalorder %v1399_v20, %v574_v6  ;;  %vm617_vm2 = vcmp.lt.s32.totalorder %v1399_v20, %v604_v12 }
 0x1a1   : > { %940 = vmatpush1.msk.msra.mxu1 %vm643_vm6, %v1198_v24  ;;  %vm641_vm12 = vmand %vm591_vm4, %vm621_vm5  ;;  %vm586_vm4 = vcmp.ge.s32.totalorder %v1422_v35, %v573_v13  ;;  %vm616_vm5 = vcmp.lt.s32.totalorder %v1422_v35, %v603_v19 }
 0x1a2   : > { %941 = vmatprep.subr.msk.mxu1 %vm642_vm9, %v1198_v24  ;;  %vm639_vm3 = vmand %vm589_vm10, %vm619_vm11  ;;  %vm614_vm10 = vcmp.lt.s32.totalorder %v1422_v35, %v602_v16 }
 0x1a3   : > { %942 = vmatpush1.msk.msra.mxu1 %vm641_vm12, %v1198_v24  ;;  %vm638_vm6 = vmand %vm588_vm13, %vm618_vm14  ;;  %vm584_vm12 = vcmp.ge.s32.totalorder %v1422_v35, %v572_v17  ;;  %vm582_vm14 = vcmp.ge.s32.totalorder %v1422_v35, %v571_v18 }
 0x1a4   : > { %943 = vmatprep.subr.msk.mxu1 %vm640_vm15, %v1198_v24  ;;  %vm637_vm9 = vmand %vm587_vm0, %vm617_vm2  ;;  %vm583_vm15 = vcmp.ge.s32.totalorder %v1399_v20, %v572_v17  ;;  %vm581_vm2 = vcmp.ge.s32.totalorder %v1399_v20, %v571_v18 }
 0x1a5   : > { %944 = vmatpush1.msk.msra.mxu1 %vm639_vm3, %v1198_v24  ;;  %vm636_vm11 = vmand %vm586_vm4, %vm616_vm5  ;;  %vm613_vm3 = vcmp.lt.s32.totalorder %v1399_v20, %v602_v16 }
 0x1a6   : > { %945 = vmatprep.subr.msk.mxu1 %vm638_vm6, %v1198_v24  ;;  %vm635_vm13 = vmand %vm585_vm7, %vm615_vm8  ;;  %vm611_vm6 = vcmp.lt.s32.totalorder %v1399_v20, %v601_v21  ;;  %vm785_vm8 = vcmp.lt.s32.totalorder %v368_v14, 240 }
 0x1a7   : > { %946 = vmatpush1.msk.msra.mxu1 %vm637_vm9, %v1198_v24  ;;  %vm634_vm0 = vmand %vm584_vm12, %vm614_vm10 }
 0x1a8   : > { %947 = vmatprep.subr.msk.mxu1 %vm636_vm11, %v1198_v24  ;;  %vm633_vm4 = vmand %vm583_vm15, %vm613_vm3 }
 0x1a9   : > { %948 = vmatpush1.msk.msra.mxu1 %vm635_vm13, %v1198_v24  ;;  %vm632_vm5 = vmand %vm582_vm14, %vm612_vm1  ;;  %vm1596_vm1 = vcmask 654336  }
 0x1aa   : > { %949 = vmatprep.subr.msk.mxu1 %vm634_vm0, %v1198_v24  ;;  %vm631_vm7 = vmand %vm581_vm2, %vm611_vm6 }
 0x1ab   : > { %950 = vmatpush1.msk.msra.mxu1 %vm633_vm4, %v1198_v24 }
 0x1ac   : > { %951 = vmatprep.subr.msk.mxu1 %vm632_vm5, %v1198_v24 }
 0x1ad   : > { %952 = vmatpush1.msk.msra.mxu1 %vm631_vm7, %v1198_v24 }
 0x25a   : > { %v1424_v38 = vpop.f32.mrf.mxu1 }
 0x25b   : > { %v469_v40 = vmul.f32 %v468_v33, %v1424_v38  ;;  %v492_v41 = vmul.f32 %v491_v34, %v1424_v38  ;;  %v517_v47 = vmul.f32 %v516_v39, %v1424_v38  ;;  %v477_v52 = vmul.f32 %v476_v43, %v1424_v38 }
 0x25c   : > { %v1004_v42 = vpop.f32.mrf.mxu1  ;;  %v501_v53 = vmul.f32 %v500_v44, %v1424_v38  ;;  %v542_v55 = vmul.f32 %v541_v49, %v1424_v38  ;;  %v526_v62 = vmul.f32 %v525_v50, %v1424_v38  ;;  %v551_v0 = vmul.f32 %v550_v51, %v1424_v38 }
 0x25d   : > { %471 = vrot.lane.b32.xlu1 %v469_v40, %s1197_s24  ;;  %v494_v46 = vrot.slane %v492_v41, 1  ;;  %v519_v54 = vrot.slane %v517_v47, 2  ;;  %v465_v26 = vmul.f32 %v464_v22, %v1424_v38  ;;  %v485_v20 = vmul.f32 %v484_v23, %v1424_v38 }
 0x25e   : > { %v503_v61 = vrot.slane %v501_v53, 1  ;;  %v544_v3 = vrot.slane %v542_v55, 3  ;;  %v528_v8 = vrot.slane %v526_v62, 2  ;;  %v553_v11 = vrot.slane %v551_v0, 3 }
 0x25f   : > { %495 = vrot.lane.b32.xlu0 %v494_v46, %s1197_s24  ;;  %v487_v30 = vrot.slane %v485_v20, 1  ;;  %v559_v50 = vstv %s558_s29  ;;  %v1199_v55 = vmov 1966171168  }
 0x261   : > { %479 = vrot.lane.b32.xlu1 %v477_v52, %s1195_s30 }
 0x263   : > { %520 = vrot.lane.b32.xlu0 %v519_v54, %s1197_s24 }
 0x265   : > { %504 = vrot.lane.b32.xlu1 %v503_v61, %s1195_s30 }
 0x267   : > { %545 = vrot.lane.b32.xlu0 %v544_v3, %s1197_s24  ;;  %s910_s24 = sld [smem:[#allocation7 + $0x9]] }
 0x269   : > { %529 = vrot.lane.b32.xlu1 %v528_v8, %s1195_s30 }
 0x26d   : > { %554 = vrot.lane.b32.xlu1 %v553_v11, %s1195_s30  ;;  %s907_s30 = sld [smem:[#allocation7 + $0x6]]  ;;  %v534_v36 = vstv %s910_s24 }
 0x26e   : > { %v535_v41 = vmul.f32 %v534_v36, %v1424_v38 }
 0x270   : > { %v537_v45 = vrot.slane %v535_v41, 3 }
 0x273   : > { %v509_v29 = vstv %s907_s30 }
 0x274   : > { %v510_v33 = vmul.f32 %v509_v29, %v1424_v38  ;;  %v769_v38 = vunpack.c.l.s4 %v1199_v55 }
 0x276   : > { %v512_v37 = vrot.slane %v510_v33, 2  ;;  %v770_v56 = vunpack.c.0.s8 %v769_v38 }
 0x278   : > { %v773_v58 = vsub.s32 %v770_v56, %v1391_v15 }
 0x2cf   : > { %v472_v25 = vpop.permute.xlu1 %471 }
 0x2d0   : > { %v474_v27 = vadd.f32 %v472_v25, %v465_v26 }
 0x2d1   : > { %v496_v24 = vpop.permute.xlu0 %495 }
 0x2d3   : > { %v480_v28 = vpop.permute.xlu1 %479 }
 0x2d4   : > { %v482_v31 = vadd.f32 %v480_v28, %v474_v27 }
 0x2d5   : > { %v521_v42 = vpop.permute.xlu0 %520 }
 0x2d6   : > { %v489_v32 = vadd.f32 %v487_v30, %v482_v31 }
 0x2d7   : > { %v505_v35 = vpop.permute.xlu1 %504 }
 0x2d8   : > { %v498_v34 = vadd.f32 %v496_v24, %v489_v32 }
 0x2d9   : > { %v546_v48 = vpop.permute.xlu0 %545 }
 0x2da   : > { %v507_v39 = vadd.f32 %v505_v35, %v498_v34 }
 0x2db   : > { %v530_v44 = vpop.permute.xlu1 %529 }
 0x2dc   : > { %v514_v40 = vadd.f32 %v512_v37, %v507_v39 }
 0x2de   : > { %v523_v43 = vadd.f32 %v521_v42, %v514_v40 }
 0x2df   : > { %v555_v51 = vpop.permute.xlu1 %554 }
 0x2e0   : > { %v532_v46 = vadd.f32 %v530_v44, %v523_v43 }
 0x2e2   : > { %v539_v47 = vadd.f32 %v537_v45, %v532_v46 }
 0x2e4   : > { %v548_v49 = vadd.f32 %v546_v48, %v539_v47 }
 0x2e6   : > { %v557_v52 = vadd.f32 %v555_v51, %v548_v49 }
 0x2e8   : > { %v560_v53 = vadd.f32 %v559_v50, %v557_v52 }
 0x2ea   : > { %v561_v54 = vmax.f32 %v560_v53, 0.0 }
 0x2ec   : > { %953 = vmatmul.mubr.msk.f32.vlgmr.msra.gmra.mxu1 %vm1596_vm1, %v561_v54 }
 0x3ac   : > { %v760_v57 = vpop.f32.mrf.mxu1 }
 0x3ae   : > { %v762_v59 = vpop.f32.mrf.mxu1 }
 0x3af   : > { %v767_v60 = vcombine.low %v760_v57, %v762_v59 }
 0x3b1   : > { %v774_v61 = vrot.slane %v767_v60, %v773_v58 }
 0x3b3   : > { %v781_v62 = vrot.slane %v774_v61, %v773_v58 }
 0x3b5   : > { %787 = vst.msk [vmem:[%s257_s13] sm:$0x3] %vm785_vm8, %v781_v62 }
 0x3b6   : > { %1130 = shalt.err (!%p1127_p1)
}
 0x3b7   : > { %s1131_s8 = scalar_lea.hbm %s801_s27, 32  ;;  %s1135_s30 = scalar_lea.hbm %s1579_s5, 64 }
 0x3b8   : > { %p1132_p4 = scmp.ne.s32.totalorder %s801_s27, %s1131_s8  ;;  %p1136_p6 = scmp.lt.s32.totalorder %s801_s27, %s1579_s5 }
 0x3b9   : > { %p1137_p13 = scmp.lt.s32.totalorder %s1135_s30, %s1131_s8 }
 0x3ba   : > { %p1133_p11 = pnand %p1132_p4, %p1597_p0 }
 0x3bb   : > { %p1138_p3 = por %p1137_p13, %p1136_p6 }
 0x3bc   : > { %p1134_p5 = pneg %p1133_p11 }
 0x3be   : > { %p1139_p12 = pnand %p1138_p3, %p1134_p5 }
 0x3c0   : > { %1142 = shalt.err (!%p1139_p12)
}
 0x3c1   : > { %1011 = dma.vmem_to_hbm [thread:$0]  (%p1597_p0), %s804_s18, 32, %s801_s27, %s789_s10  }
 0x3c2 PF: > { %s815_s9 = sand.u32 1, %s1173_s20   ;;  %p1598_p2 = scmp.ne.s32.totalorder %s1588_s7, 0 }
 0x3c3   : > { %p1599_p7 = scmp.ge.s32.totalorder %s1185_s23, 2  ;;  %s816_s17 = scalar_lea.sflag [#allocation5], %s815_s9 }
 0x3c5   : > { %p1022_p8 = pnand %p1599_p7, %p1598_p2 }
 0x3c7   : > { %p1023_p9 = pneg %p1022_p8 }
 0x3c9   : > { %1168 = dma.done.wait (%p1023_p9), %s816_s17, 32  }
 0x3ca   : > { %1170 = vsyncadd (%p1023_p9), %s816_s17, 4294967264  ;;  %p20_p10 = scmp.ge.s32.totalorder %s1259_s25, 4   ;;  %s1600_s20 = smov %s1177_s21 }
 0x3cb   : > { %s1601_s21 = smov %s1181_s22  ;;  %s1602_s22 = smov %s1271_s28 }
 0x3cc   : > { %s1603_s23 = smov %s1259_s25  ;;  %22 = sbr.rel (!%p20_p10) target bundleno = 8 (0x8), region = 90 }
 0x3d1   :  { %821 = vsyncpa [#allocation4], 1 }
 0x3d2   :  { %823 = vsyncpa [#allocation4 + $0x1], 1 }
 0x3d3   :  { %824 = vsyncpa [#allocation5], 1 }
 0x3d4   :  { %826 = vsyncpa [#allocation5 + $0x1], 1 }
 0x3d5   :  { %827 = vsyncpa [#allocation6], 1 }
 0x3d6   :  { %829 = vsyncpa [#allocation6 + $0x1], 1 }

</bundles_post_ra>
